<compile_context>
chip_gen: v6e
topology: v6e:2x2x1
jax: 0.10.0
libtpu: 0.0.40
codegen_flags: <defaults>
</compile_context>

<pallas_src>
import jax
import jax.numpy as jnp
from jax.experimental import pallas as pl
from jax.experimental.pallas import tpu as pltpu

EPS = 1e-5
PAD = 128  # padded hidden width: one full vreg lane dimension / MXU tile


def _make_kernel(in_features, out_features):
    """Builds the kernel with in/out feature counts baked in as Python ints."""

    def kernel(x_ref, w_ref, v_ref, o_ref):
        # x:(B,in_features) f32, w:(4,PAD,PAD) bf16, v:(8,PAD) f32, o:(B,out_features) f32

        def block(h, w, g, bt):
            # Linear (bias omitted: exactly cancelled by batch-stat BatchNorm).
            z = jnp.dot(h.astype(jnp.bfloat16), w, preferred_element_type=jnp.float32)
            # BatchNorm1d, training mode (biased batch variance), one-pass stats.
            mean = jnp.mean(z, axis=0, keepdims=True)
            mean_sq = jnp.mean(z * z, axis=0, keepdims=True)
            var = mean_sq - mean * mean
            s = g * jax.lax.rsqrt(var + EPS)          # (1, PAD); padded lanes: g == 0
            zn = z * s + (bt - mean * s)              # one FMA per element
            # Sigmoid via EUP tanh (== 1/(1+exp(-x))).
            return 0.5 * (jnp.tanh(0.5 * zn) + 1.0)

        h = x_ref[...]                                # (B, in_features) f32
        h = block(h, w_ref[0, pl.ds(0, in_features), :], v_ref[0], v_ref[1])
        h = block(h, w_ref[1], v_ref[2], v_ref[3])
        h = block(h, w_ref[2], v_ref[4], v_ref[5])
        # Final Linear (+ bias), then keep only the real output lanes.
        logits = jnp.dot(h.astype(jnp.bfloat16), w_ref[3],
                         preferred_element_type=jnp.float32) + v_ref[6]
        o_ref[...] = logits[:, :out_features]

    return kernel


def mlp_forward(x, w_slab, v_slab, out_features=3):
    batch, in_features = x.shape
    assert in_features <= PAD, "single-tile design: in_features must fit in 128 lanes"

    vmem = pl.BlockSpec(memory_space=pltpu.MemorySpace.VMEM)

    # VMEM budget: params + a handful of live (B, PAD) f32 buffers + headroom.
    param_bytes = (w_slab.size * w_slab.dtype.itemsize
                   + v_slab.size * v_slab.dtype.itemsize)
    act_bytes = 8 * batch * PAD * 4
    vmem_limit = min(int(param_bytes + act_bytes + (4 << 20)), 48 << 20)  # < v7x 64 MiB

    return pl.pallas_call(
        _make_kernel(in_features, out_features),
        out_shape=jax.ShapeDtypeStruct((batch, out_features), jnp.float32),
        in_specs=[vmem, vmem, vmem],
        out_specs=vmem,
        compiler_params=pltpu.CompilerParams(vmem_limit_bytes=vmem_limit),
    )(x, w_slab, v_slab)


def init_mlp_params(key, input_size):
    """PyTorch-default Linear init packed into two zero-padded slabs.

    w_slab: (4, PAD, PAD) bf16 -- the four weight matrices, (in, out) layout.
    v_slab: (8, PAD)  f32      -- rows [g1, bt1, g2, bt2, g3, bt3, b_out, unused].
    """
    hidden1 = int(2 / 3 * input_size + 1)
    hidden2 = hidden1 // 2
    hidden3 = hidden2 // 2
    dims = [input_size, hidden1, hidden2, hidden3, 3]

    w_slab = jnp.zeros((4, PAD, PAD), jnp.bfloat16)
    v_slab = jnp.zeros((8, PAD), jnp.float32)

    keys = jax.random.split(key, 4)
    for i in range(4):
        fan_in, fan_out = dims[i], dims[i + 1]
        kw, kb = jax.random.split(keys[i])
        bound = 1.0 / float(fan_in) ** 0.5
        w = jax.random.uniform(kw, (fan_in, fan_out), jnp.float32, -bound, bound)
        w_slab = w_slab.at[i, :fan_in, :fan_out].set(w.astype(jnp.bfloat16))
        if i < 3:
            # Linear bias is a mathematical no-op under batch-stat BatchNorm -> not stored.
            v_slab = v_slab.at[2 * i + 0, :fan_out].set(1.0)   # BN gamma (padded cols stay 0)
            # BN beta row (2*i+1) stays zero == PyTorch init.
        else:
            b = jax.random.uniform(kb, (fan_out,), jnp.float32, -bound, bound)
            v_slab = v_slab.at[6, :fan_out].set(b)             # final Linear bias
    return w_slab, v_slab, dims


def mlp_reference(x, w_slab, v_slab, dims):
    """Pure-jnp f32 reference on the unpadded parameter slices."""
    h = x
    for i in range(3):
        fi, fo = dims[i], dims[i + 1]
        w = w_slab[i, :fi, :fo].astype(jnp.float32)
        g = v_slab[2 * i + 0, :fo]
        bt = v_slab[2 * i + 1, :fo]
        z = h @ w                      # bias omitted: cancelled exactly by BatchNorm
        mean = jnp.mean(z, axis=0, keepdims=True)
        var = jnp.mean((z - mean) ** 2, axis=0, keepdims=True)
        h = jax.nn.sigmoid((z - mean) * jax.lax.rsqrt(var + EPS) * g + bt)
    w4 = w_slab[3, :dims[3], :dims[4]].astype(jnp.float32)
    return h @ w4 + v_slab[6, :dims[4]]


if __name__ == "__main__":
    key = jax.random.PRNGKey(0)
    k_x, k_p = jax.random.split(key)

    input_size = 48          # -> hidden sizes 33, 16, 8, output 3
    batch = 8

    x = jax.random.normal(k_x, (batch, input_size), jnp.float32)
    w_slab, v_slab, dims = init_mlp_params(k_p, input_size)

    out = mlp_forward(x, w_slab, v_slab, out_features=3)
    jax.block_until_ready(out)

    assert out.shape == (batch, 3)
    assert out.dtype == jnp.float32

    ref = mlp_reference(x, w_slab, v_slab, dims)
    # bf16 weights + bf16 activation casts inside the kernel -> loosened tolerance.
    assert jnp.allclose(out, ref, atol=1e-2, rtol=1e-2), "kernel/ref mismatch"

    print("KERNEL_OK")
</pallas_src>

<mosaic_0001>
module attributes {stable_mosaic.version = 11 : i64} {
  func.func @kernel(%arg0: memref<8x48xf32, #tpu.memory_space<vmem>>, %arg1: memref<4x128x128xbf16, #tpu.memory_space<vmem>>, %arg2: memref<8x128xf32, #tpu.memory_space<vmem>>, %arg3: memref<8x3xf32, #tpu.memory_space<vmem>>) attributes {dimension_semantics = [], scalar_prefetch = 0 : i64, scratch_operands = 0 : i64, tpu.core_type = #tpu.core_type<tc>} {
    %c0 = arith.constant 0 : index
    %c0_0 = arith.constant 0 : index
    %0 = vector.load %arg0[%c0, %c0_0] : memref<8x48xf32, #tpu.memory_space<vmem>>, vector<8x48xf32>
    %c0_1 = arith.constant 0 : index
    %c0_2 = arith.constant 0 : index
    %c0_3 = arith.constant 0 : index
    %1 = vector.load %arg1[%c0_1, %c0_2, %c0_3] : memref<4x128x128xbf16, #tpu.memory_space<vmem>>, vector<1x48x128xbf16>
    %2 = vector.shape_cast %1 : vector<1x48x128xbf16> to vector<48x128xbf16>
    %c0_4 = arith.constant 0 : index
    %c0_5 = arith.constant 0 : index
    %3 = vector.load %arg2[%c0_4, %c0_5] : memref<8x128xf32, #tpu.memory_space<vmem>>, vector<1x128xf32>
    %4 = vector.shape_cast %3 : vector<1x128xf32> to vector<128xf32>
    %c1 = arith.constant 1 : index
    %c0_6 = arith.constant 0 : index
    %5 = vector.load %arg2[%c1, %c0_6] : memref<8x128xf32, #tpu.memory_space<vmem>>, vector<1x128xf32>
    %6 = vector.shape_cast %5 : vector<1x128xf32> to vector<128xf32>
    %7 = arith.truncf %0 : vector<8x48xf32> to vector<8x48xbf16>
    %cst = arith.constant dense<0.000000e+00> : vector<8x128xf32>
    %8 = tpu.matmul %7, %2, %cst {dimension_numbers = #tpu.dot_dimension_numbers<[1], [0], [0], [1], [0, 0, 1, 1], [], []>} : vector<8x48xbf16>, vector<48x128xbf16>, vector<8x128xf32> -> vector<8x128xf32>
    %cst_7 = arith.constant dense<0.000000e+00> : vector<128xf32>
    %9 = vector.multi_reduction <add>, %8, %cst_7 [0] : vector<8x128xf32> to vector<128xf32>
    %10 = vector.shape_cast %9 : vector<128xf32> to vector<1x128xf32>
    %cst_8 = arith.constant 8.000000e+00 : f32
    %11 = vector.broadcast %cst_8 : f32 to vector<1x128xf32>
    %12 = arith.divf %10, %11 : vector<1x128xf32>
    %13 = arith.mulf %8, %8 : vector<8x128xf32>
    %cst_9 = arith.constant dense<0.000000e+00> : vector<128xf32>
    %14 = vector.multi_reduction <add>, %13, %cst_9 [0] : vector<8x128xf32> to vector<128xf32>
    %15 = vector.shape_cast %14 : vector<128xf32> to vector<1x128xf32>
    %cst_10 = arith.constant 8.000000e+00 : f32
    %16 = vector.broadcast %cst_10 : f32 to vector<1x128xf32>
    %17 = arith.divf %15, %16 : vector<1x128xf32>
    %18 = arith.mulf %12, %12 : vector<1x128xf32>
    %19 = arith.subf %17, %18 : vector<1x128xf32>
    %cst_11 = arith.constant 9.99999974E-6 : f32
    %20 = vector.broadcast %cst_11 : f32 to vector<1x128xf32>
    %21 = arith.addf %19, %20 : vector<1x128xf32>
    %22 = math.rsqrt %21 : vector<1x128xf32>
    %23 = vector.shape_cast %4 : vector<128xf32> to vector<1x128xf32>
    %24 = arith.mulf %23, %22 : vector<1x128xf32>
    %25 = vector.broadcast %24 : vector<1x128xf32> to vector<8x128xf32>
    %26 = arith.mulf %8, %25 : vector<8x128xf32>
    %27 = arith.mulf %12, %24 : vector<1x128xf32>
    %28 = vector.shape_cast %6 : vector<128xf32> to vector<1x128xf32>
    %29 = arith.subf %28, %27 : vector<1x128xf32>
    %30 = vector.broadcast %29 : vector<1x128xf32> to vector<8x128xf32>
    %31 = arith.addf %26, %30 : vector<8x128xf32>
    %cst_12 = arith.constant 5.000000e-01 : f32
    %32 = vector.broadcast %cst_12 : f32 to vector<8x128xf32>
    %33 = arith.mulf %32, %31 : vector<8x128xf32>
    %34 = math.tanh %33 : vector<8x128xf32>
    %cst_13 = arith.constant 1.000000e+00 : f32
    %35 = vector.broadcast %cst_13 : f32 to vector<8x128xf32>
    %36 = arith.addf %34, %35 : vector<8x128xf32>
    %cst_14 = arith.constant 5.000000e-01 : f32
    %37 = vector.broadcast %cst_14 : f32 to vector<8x128xf32>
    %38 = arith.mulf %37, %36 : vector<8x128xf32>
    %c1_15 = arith.constant 1 : index
    %c0_16 = arith.constant 0 : index
    %c0_17 = arith.constant 0 : index
    %39 = vector.load %arg1[%c1_15, %c0_16, %c0_17] : memref<4x128x128xbf16, #tpu.memory_space<vmem>>, vector<1x128x128xbf16>
    %40 = vector.shape_cast %39 : vector<1x128x128xbf16> to vector<128x128xbf16>
    %c2 = arith.constant 2 : index
    %c0_18 = arith.constant 0 : index
    %41 = vector.load %arg2[%c2, %c0_18] : memref<8x128xf32, #tpu.memory_space<vmem>>, vector<1x128xf32>
    %42 = vector.shape_cast %41 : vector<1x128xf32> to vector<128xf32>
    %c3 = arith.constant 3 : index
    %c0_19 = arith.constant 0 : index
    %43 = vector.load %arg2[%c3, %c0_19] : memref<8x128xf32, #tpu.memory_space<vmem>>, vector<1x128xf32>
    %44 = vector.shape_cast %43 : vector<1x128xf32> to vector<128xf32>
    %45 = arith.truncf %38 : vector<8x128xf32> to vector<8x128xbf16>
    %cst_20 = arith.constant dense<0.000000e+00> : vector<8x128xf32>
    %46 = tpu.matmul %45, %40, %cst_20 {dimension_numbers = #tpu.dot_dimension_numbers<[1], [0], [0], [1], [0, 0, 1, 1], [], []>} : vector<8x128xbf16>, vector<128x128xbf16>, vector<8x128xf32> -> vector<8x128xf32>
    %cst_21 = arith.constant dense<0.000000e+00> : vector<128xf32>
    %47 = vector.multi_reduction <add>, %46, %cst_21 [0] : vector<8x128xf32> to vector<128xf32>
    %48 = vector.shape_cast %47 : vector<128xf32> to vector<1x128xf32>
    %cst_22 = arith.constant 8.000000e+00 : f32
    %49 = vector.broadcast %cst_22 : f32 to vector<1x128xf32>
    %50 = arith.divf %48, %49 : vector<1x128xf32>
    %51 = arith.mulf %46, %46 : vector<8x128xf32>
    %cst_23 = arith.constant dense<0.000000e+00> : vector<128xf32>
    %52 = vector.multi_reduction <add>, %51, %cst_23 [0] : vector<8x128xf32> to vector<128xf32>
    %53 = vector.shape_cast %52 : vector<128xf32> to vector<1x128xf32>
    %cst_24 = arith.constant 8.000000e+00 : f32
    %54 = vector.broadcast %cst_24 : f32 to vector<1x128xf32>
    %55 = arith.divf %53, %54 : vector<1x128xf32>
    %56 = arith.mulf %50, %50 : vector<1x128xf32>
    %57 = arith.subf %55, %56 : vector<1x128xf32>
    %cst_25 = arith.constant 9.99999974E-6 : f32
    %58 = vector.broadcast %cst_25 : f32 to vector<1x128xf32>
    %59 = arith.addf %57, %58 : vector<1x128xf32>
    %60 = math.rsqrt %59 : vector<1x128xf32>
    %61 = vector.shape_cast %42 : vector<128xf32> to vector<1x128xf32>
    %62 = arith.mulf %61, %60 : vector<1x128xf32>
    %63 = vector.broadcast %62 : vector<1x128xf32> to vector<8x128xf32>
    %64 = arith.mulf %46, %63 : vector<8x128xf32>
    %65 = arith.mulf %50, %62 : vector<1x128xf32>
    %66 = vector.shape_cast %44 : vector<128xf32> to vector<1x128xf32>
    %67 = arith.subf %66, %65 : vector<1x128xf32>
    %68 = vector.broadcast %67 : vector<1x128xf32> to vector<8x128xf32>
    %69 = arith.addf %64, %68 : vector<8x128xf32>
    %cst_26 = arith.constant 5.000000e-01 : f32
    %70 = vector.broadcast %cst_26 : f32 to vector<8x128xf32>
    %71 = arith.mulf %70, %69 : vector<8x128xf32>
    %72 = math.tanh %71 : vector<8x128xf32>
    %cst_27 = arith.constant 1.000000e+00 : f32
    %73 = vector.broadcast %cst_27 : f32 to vector<8x128xf32>
    %74 = arith.addf %72, %73 : vector<8x128xf32>
    %cst_28 = arith.constant 5.000000e-01 : f32
    %75 = vector.broadcast %cst_28 : f32 to vector<8x128xf32>
    %76 = arith.mulf %75, %74 : vector<8x128xf32>
    %c2_29 = arith.constant 2 : index
    %c0_30 = arith.constant 0 : index
    %c0_31 = arith.constant 0 : index
    %77 = vector.load %arg1[%c2_29, %c0_30, %c0_31] : memref<4x128x128xbf16, #tpu.memory_space<vmem>>, vector<1x128x128xbf16>
    %78 = vector.shape_cast %77 : vector<1x128x128xbf16> to vector<128x128xbf16>
    %c4 = arith.constant 4 : index
    %c0_32 = arith.constant 0 : index
    %79 = vector.load %arg2[%c4, %c0_32] : memref<8x128xf32, #tpu.memory_space<vmem>>, vector<1x128xf32>
    %80 = vector.shape_cast %79 : vector<1x128xf32> to vector<128xf32>
    %c5 = arith.constant 5 : index
    %c0_33 = arith.constant 0 : index
    %81 = vector.load %arg2[%c5, %c0_33] : memref<8x128xf32, #tpu.memory_space<vmem>>, vector<1x128xf32>
    %82 = vector.shape_cast %81 : vector<1x128xf32> to vector<128xf32>
    %83 = arith.truncf %76 : vector<8x128xf32> to vector<8x128xbf16>
    %cst_34 = arith.constant dense<0.000000e+00> : vector<8x128xf32>
    %84 = tpu.matmul %83, %78, %cst_34 {dimension_numbers = #tpu.dot_dimension_numbers<[1], [0], [0], [1], [0, 0, 1, 1], [], []>} : vector<8x128xbf16>, vector<128x128xbf16>, vector<8x128xf32> -> vector<8x128xf32>
    %cst_35 = arith.constant dense<0.000000e+00> : vector<128xf32>
    %85 = vector.multi_reduction <add>, %84, %cst_35 [0] : vector<8x128xf32> to vector<128xf32>
    %86 = vector.shape_cast %85 : vector<128xf32> to vector<1x128xf32>
    %cst_36 = arith.constant 8.000000e+00 : f32
    %87 = vector.broadcast %cst_36 : f32 to vector<1x128xf32>
    %88 = arith.divf %86, %87 : vector<1x128xf32>
    %89 = arith.mulf %84, %84 : vector<8x128xf32>
    %cst_37 = arith.constant dense<0.000000e+00> : vector<128xf32>
    %90 = vector.multi_reduction <add>, %89, %cst_37 [0] : vector<8x128xf32> to vector<128xf32>
    %91 = vector.shape_cast %90 : vector<128xf32> to vector<1x128xf32>
    %cst_38 = arith.constant 8.000000e+00 : f32
    %92 = vector.broadcast %cst_38 : f32 to vector<1x128xf32>
    %93 = arith.divf %91, %92 : vector<1x128xf32>
    %94 = arith.mulf %88, %88 : vector<1x128xf32>
    %95 = arith.subf %93, %94 : vector<1x128xf32>
    %cst_39 = arith.constant 9.99999974E-6 : f32
    %96 = vector.broadcast %cst_39 : f32 to vector<1x128xf32>
    %97 = arith.addf %95, %96 : vector<1x128xf32>
    %98 = math.rsqrt %97 : vector<1x128xf32>
    %99 = vector.shape_cast %80 : vector<128xf32> to vector<1x128xf32>
    %100 = arith.mulf %99, %98 : vector<1x128xf32>
    %101 = vector.broadcast %100 : vector<1x128xf32> to vector<8x128xf32>
    %102 = arith.mulf %84, %101 : vector<8x128xf32>
    %103 = arith.mulf %88, %100 : vector<1x128xf32>
    %104 = vector.shape_cast %82 : vector<128xf32> to vector<1x128xf32>
    %105 = arith.subf %104, %103 : vector<1x128xf32>
    %106 = vector.broadcast %105 : vector<1x128xf32> to vector<8x128xf32>
    %107 = arith.addf %102, %106 : vector<8x128xf32>
    %cst_40 = arith.constant 5.000000e-01 : f32
    %108 = vector.broadcast %cst_40 : f32 to vector<8x128xf32>
    %109 = arith.mulf %108, %107 : vector<8x128xf32>
    %110 = math.tanh %109 : vector<8x128xf32>
    %cst_41 = arith.constant 1.000000e+00 : f32
    %111 = vector.broadcast %cst_41 : f32 to vector<8x128xf32>
    %112 = arith.addf %110, %111 : vector<8x128xf32>
    %cst_42 = arith.constant 5.000000e-01 : f32
    %113 = vector.broadcast %cst_42 : f32 to vector<8x128xf32>
    %114 = arith.mulf %113, %112 : vector<8x128xf32>
    %115 = arith.truncf %114 : vector<8x128xf32> to vector<8x128xbf16>
    %c3_43 = arith.constant 3 : index
    %c0_44 = arith.constant 0 : index
    %c0_45 = arith.constant 0 : index
    %116 = vector.load %arg1[%c3_43, %c0_44, %c0_45] : memref<4x128x128xbf16, #tpu.memory_space<vmem>>, vector<1x128x128xbf16>
    %117 = vector.shape_cast %116 : vector<1x128x128xbf16> to vector<128x128xbf16>
    %cst_46 = arith.constant dense<0.000000e+00> : vector<8x128xf32>
    %118 = tpu.matmul %115, %117, %cst_46 {dimension_numbers = #tpu.dot_dimension_numbers<[1], [0], [0], [1], [0, 0, 1, 1], [], []>} : vector<8x128xbf16>, vector<128x128xbf16>, vector<8x128xf32> -> vector<8x128xf32>
    %c6 = arith.constant 6 : index
    %c0_47 = arith.constant 0 : index
    %119 = vector.load %arg2[%c6, %c0_47] : memref<8x128xf32, #tpu.memory_space<vmem>>, vector<1x128xf32>
    %120 = vector.shape_cast %119 : vector<1x128xf32> to vector<128xf32>
    %121 = vector.shape_cast %120 : vector<128xf32> to vector<1x128xf32>
    %122 = vector.broadcast %121 : vector<1x128xf32> to vector<8x128xf32>
    %123 = arith.addf %118, %122 : vector<8x128xf32>
    %124 = vector.extract_strided_slice %123 {offsets = [0, 0], sizes = [8, 3], strides = [1, 1]} : vector<8x128xf32> to vector<8x3xf32>
    %c0_48 = arith.constant 0 : index
    %c0_49 = arith.constant 0 : index
    %125 = vector.load %arg3[%c0_48, %c0_49] : memref<8x3xf32, #tpu.memory_space<vmem>>, vector<8x3xf32>
    tpu.vector_store %arg3[%c0_48, %c0_49], %124 {strides = array<i32>} : memref<8x3xf32, #tpu.memory_space<vmem>>, vector<8x3xf32>,
    return
  }
}

</mosaic_0001>

<bundles_post_ra>
// kernel: tpu_custom_call.1
= control target key start
LH: loop header
LB: loop body
LE: loop exit
PB: predicated region body
PF: predicated region fallthrough
CT: control target
= control target key end

     0   :  { %8 = vsyncpa [#allocation3], 0  ;;  %s890_s0 = inlined_call_operand.hbm [shape: f32[8,48], index: 0, kind: input, shape index: {}]   ;;  %s891_s1 = inlined_call_operand.hbm [shape: bf16[4,128,128], index: 1, kind: input, shape index: {}]   ;;  %s892_s2 = inlined_call_operand.hbm [shape: f32[8,128], index: 2, kind: input, shape index: {}]   ;;  %s893_s3 = inlined_call_operand.vmem [shape: f32[8,3], index: 3, kind: output, shape index: {}]  }
   0x1   :  { %9 = vsyncpa [#allocation5], 0  ;;  %s808_s12 = smov [#allocation4]  }
   0x2   :  { %s25_s13 = sshll.u32 %s808_s12, 4  ;;  %s26_s13 = int_to_ptr.vmem [resolvable:$true] %s25_s13 }
   0x3   :  { %s752_s14 = scalar_lea.vmem %s26_s13, 4096  ;;  %p757_p1 = scmp.lt.s32.totalorder %s26_s13, %s26_s13 }
   0x4   :  { %p753_p0 = scmp.ne.s32.totalorder %s26_s13, %s752_s14  ;;  %p758_p2 = scmp.lt.s32.totalorder %s752_s14, %s752_s14 }
   0x6   :  { %p759_p3 = por %p758_p2, %p757_p1 }
   0x8   :  { %p760_p4 = pnand %p759_p3, %p753_p0 }
   0xa   :  { %763 = shalt.err (!%p760_p4)
}
   0xb   :  { %s809_s15 = smov 64   ;;  %s810_s16 = smov 4  }
   0xc   :  { %31 = dma.hbm_to_vmem [thread:$0]  %s891_s1, 4096, %s26_s13, [#allocation5], %s809_s15, %s809_s15, %s810_s16  }
   0xd   :  { %s811_s19 = smov [#allocation2]   ;;  %s812_s21 = smov [#allocation6]  }
   0xe   :  { %s16_s20 = sshll.u32 %s811_s19, 4  ;;  %s38_s22 = sshll.u32 %s812_s21, 4  ;;  %s17_s20 = int_to_ptr.vmem [resolvable:$true] %s16_s20  ;;  %s39_s22 = int_to_ptr.vmem [resolvable:$true] %s38_s22 }
   0xf   :  { %s772_s23 = scalar_lea.vmem %s17_s20, 128  ;;  %p777_p6 = scmp.lt.s32.totalorder %s17_s20, %s17_s20 }
  0x10   :  { %p773_p5 = scmp.ne.s32.totalorder %s17_s20, %s772_s23  ;;  %p778_p7 = scmp.lt.s32.totalorder %s772_s23, %s772_s23 }
  0x12   :  { %p779_p8 = por %p778_p7, %p777_p6 }
  0x14   :  { %p780_p9 = pnand %p779_p8, %p773_p5 }
  0x16   :  { %783 = shalt.err (!%p780_p9)
}
  0x17   :  { %19 = dma.hbm_to_vmem [thread:$0]  %s890_s0, 128, %s17_s20, [#allocation3]  }
  0x18   :  { %s792_s26 = scalar_lea.vmem %s39_s22, 128  ;;  %p797_p11 = scmp.lt.s32.totalorder %s39_s22, %s39_s22 }
  0x19   :  { %p793_p10 = scmp.ne.s32.totalorder %s39_s22, %s792_s26  ;;  %p798_p12 = scmp.lt.s32.totalorder %s792_s26, %s792_s26 }
  0x1b   :  { %p799_p13 = por %p798_p12, %p797_p11 }
  0x1d   :  { %p800_p0 = pnand %p799_p13, %p793_p10 }
  0x1f   :  { %803 = shalt.err (!%p800_p0)
}
  0x20   :  { %41 = dma.hbm_to_vmem [thread:$0]  %s892_s2, 128, %s39_s22, [#allocation5]  }
  0x21   :  { %804 = dma.done.wait [#allocation3], 128  }
  0x22   :  { %805 = vsyncadd [#allocation3], 4294967168 }
  0x23   :  { %806 = dma.done.wait [#allocation5], 4224  }
  0x24   :  { %807 = vsyncadd [#allocation5], 4294963072  ;;  %v813_v0 = vmov 0.0   ;;  %vm814_vm0 = vmmov 0   ;;  %v705_v1 = vld [vmem:[#allocation4 + $0x10] sm:$0xff]   ;;  %v706_v2 = vld [vmem:[#allocation4 + $0x8] sm:$0xff]   ;;  %v145_v36 = vlaneseq }
  0x25   :  { %628 = vmatprep.subr.bf16.mxu0 %v813_v0  ;;  %634 = vmatprep.mubr.msk.bf16.mxu0 %vm814_vm0, %v813_v0  ;;  %vm80_vm1 = vcmask 392192   ;;  %v707_v3 = vld [vmem:[#allocation4] sm:$0xff]   ;;  %v52_v4 = vld [vmem:[#allocation2] sm:$0xff]  ;;  %v709_v7 = vld [vmem:[#allocation4 + $0x70] sm:$0xff]   ;;  %vm560_vm2 = vcmask 23552  }
  0x26   :  { %638 = vmatprep.subr.bf16.mxu1 %v813_v0  ;;  %654 = vmatprep.mubr.msk.bf16.mxu1 %vm814_vm0, %v813_v0  ;;  %v61_v5 = vpack.c.bf16 %v52_v4, %v52_v4  ;;  %v708_v6 = vld [vmem:[#allocation4 + $0x78] sm:$0xff]   ;;  %v710_v8 = vld [vmem:[#allocation4 + $0x68] sm:$0xff]   ;;  %v711_v9 = vld [vmem:[#allocation4 + $0x60] sm:$0xff]   ;;  %v146_v37 = vshrl.u32 %v145_v36, 7 }
  0x27   :  { %629 = vmatpush3.bf16.msra.mxu0 %v705_v1  ;;  %639 = vmatpush3.bf16.msra.mxu1 %v708_v6  ;;  %v712_v10 = vld [vmem:[#allocation4 + $0x58] sm:$0xff]   ;;  %v713_v11 = vld [vmem:[#allocation4 + $0x50] sm:$0xff]   ;;  %v714_v12 = vld [vmem:[#allocation4 + $0x48] sm:$0xff]  }
  0x28   :  { %630 = vmatprep.subr.bf16.mxu0 %v813_v0  ;;  %640 = vmatprep.subr.bf16.mxu1 %v813_v0  ;;  %v715_v13 = vld [vmem:[#allocation4 + $0x40] sm:$0xff]   ;;  %v863_v39 = vsub.s32 0, %v146_v37  ;;  %v716_v54 = vld [vmem:[#allocation4 + $0xb8] sm:$0xff]   ;;  %v717_v55 = vld [vmem:[#allocation4 + $0xb0] sm:$0xff]  }
  0x29   :  { %v59_v38 = vld [vmem:[#allocation6] sm:$0x1]  ;;  %v60_v42 = vld [vmem:[#allocation6 + $0x1] sm:$0x1]  ;;  %v718_v56 = vld [vmem:[#allocation4 + $0xa8] sm:$0xff]  }
  0x2a   :  { %v719_v57 = vld [vmem:[#allocation4 + $0xa0] sm:$0xff]   ;;  %v720_v58 = vld [vmem:[#allocation4 + $0x98] sm:$0xff]   ;;  %v721_v59 = vld [vmem:[#allocation4 + $0x90] sm:$0xff]  }
  0x2b   :  { %631 = vmatpush3.bf16.msra.mxu0 %v706_v2  ;;  %641 = vmatpush3.bf16.msra.mxu1 %v709_v7  ;;  %v722_v60 = vld [vmem:[#allocation4 + $0x88] sm:$0xff]   ;;  %v723_v61 = vld [vmem:[#allocation4 + $0x80] sm:$0xff]   ;;  %v724_v36 = vld [vmem:[#allocation4 + $0xf8] sm:$0xff]  }
  0x2c   :  { %632 = vmatprep.subr.bf16.mxu0 %v813_v0  ;;  %642 = vmatprep.subr.bf16.mxu1 %v813_v0  ;;  %v725_v37 = vld [vmem:[#allocation4 + $0xf0] sm:$0xff]  }
  0x2f   :  { %633 = vmatpush3.bf16.msra.mxu0 %v707_v3  ;;  %643 = vmatpush3.bf16.msra.mxu1 %v710_v8 }
  0x30   :  { %658 = vmatprep.subr.bf16.mxu0 %v813_v0  ;;  %644 = vmatprep.subr.bf16.mxu1 %v813_v0 }
  0x32   :  { %635 = vmatmul.mubr.msk.bf16.vlgmr.msra.gmra.mxu0 %vm80_vm1, %v61_v5 }
  0x33   :  { %674 = vmatprep.mubr.msk.bf16.mxu0 %vm814_vm0, %v813_v0  ;;  %645 = vmatpush3.bf16.msra.mxu1 %v711_v9 }
  0x34   :  { %646 = vmatprep.subr.bf16.mxu1 %v813_v0  ;;  %659 = vmatpush3.bf16.msra.mxu0 %v716_v54 }
  0x35   :  { %660 = vmatprep.subr.bf16.mxu0 %v813_v0 }
  0x37   :  { %647 = vmatpush3.bf16.msra.mxu1 %v712_v10 }
  0x38   :  { %648 = vmatprep.subr.bf16.mxu1 %v813_v0  ;;  %661 = vmatpush3.bf16.msra.mxu0 %v717_v55 }
  0x39   :  { %662 = vmatprep.subr.bf16.mxu0 %v813_v0 }
  0x3b   :  { %649 = vmatpush3.bf16.msra.mxu1 %v713_v11 }
  0x3c   :  { %650 = vmatprep.subr.bf16.mxu1 %v813_v0  ;;  %663 = vmatpush3.bf16.msra.mxu0 %v718_v56 }
  0x3d   :  { %664 = vmatprep.subr.bf16.mxu0 %v813_v0 }
  0x3f   :  { %651 = vmatpush3.bf16.msra.mxu1 %v714_v12 }
  0x40   :  { %652 = vmatprep.subr.bf16.mxu1 %v813_v0  ;;  %665 = vmatpush3.bf16.msra.mxu0 %v719_v57 }
  0x41   :  { %666 = vmatprep.subr.bf16.mxu0 %v813_v0 }
  0x43   :  { %653 = vmatpush3.bf16.msra.mxu1 %v715_v13 }
  0x44   :  { %678 = vmatprep.subr.bf16.mxu1 %v813_v0  ;;  %667 = vmatpush3.bf16.msra.mxu0 %v720_v58 }
  0x45   :  { %668 = vmatprep.subr.bf16.mxu0 %v813_v0 }
  0x48   :  { %669 = vmatpush3.bf16.msra.mxu0 %v721_v59 }
  0x49   :  { %670 = vmatprep.subr.bf16.mxu0 %v813_v0 }
  0x4c   :  { %671 = vmatpush3.bf16.msra.mxu0 %v722_v60 }
  0x4d   :  { %672 = vmatprep.subr.bf16.mxu0 %v813_v0 }
  0x50   :  { %673 = vmatpush3.bf16.msra.mxu0 %v723_v61 }
  0xf2   :  { %v118_v14 = vpop.f32.mrf.mxu0 }
  0xf3   :  { %v124_v15 = vrot.slane %v118_v14, 4  ;;  %v132_v16 = vmul.f32 %v118_v14, %v118_v14 }
  0xf4   :  { %v636_v17 = vpop.f32.mrf.mxu0 }
  0xf5   :  { %v125_v18 = vadd.f32 %v124_v15, %v118_v14  ;;  %v133_v19 = vrot.slane %v132_v16, 4 }
  0xf6   :  { %v121_v20 = vpop.f32.mrf.mxu0 }
  0xf7   :  { %v126_v21 = vrot.slane %v125_v18, 2  ;;  %v134_v22 = vadd.f32 %v133_v19, %v132_v16 }
  0xf8   :  { %v637_v23 = vpop.f32.mrf.mxu0 }
  0xf9   :  { %v127_v24 = vadd.f32 %v126_v21, %v125_v18  ;;  %v135_v25 = vrot.slane %v134_v22, 2  ;;  %v178_v21 = vld [vmem:[#allocation6 + $0x2] sm:$0x1] }
  0xfb   :  { %v128_v26 = vrot.slane %v127_v24, 1  ;;  %v136_v27 = vadd.f32 %v135_v25, %v134_v22 }
  0xfd   :  { %v129_v28 = vadd.f32 %v128_v26, %v127_v24  ;;  %v137_v29 = vrot.slane %v136_v27, 1  ;;  %v179_v24 = vld [vmem:[#allocation6 + $0x3] sm:$0x1] }
  0xff   :  { %v131_v30 = vmul.f32 0.125, %v129_v28  ;;  %v138_v31 = vadd.f32 %v137_v29, %v136_v27 }
 0x101   :  { %v139_v32 = vmul.f32 0.125, %v138_v31  ;;  %v140_v33 = vmul.f32 %v131_v30, %v131_v30 }
 0x103   :  { %v141_v34 = vsub.f32 %v139_v32, %v140_v33 }
 0x105   :  { %v142_v35 = vadd.f32 1e-05, %v141_v34 }
 0x107   :  { %732 = vrsqrt.f32 %v142_v35 }
 0x114   :  { %v733_v40 = vpop.eup %732 }
 0x115   :  { %v144_v41 = vmul.f32 %v733_v40, %v59_v38  ;;  %v726_v38 = vld [vmem:[#allocation4 + $0xe8] sm:$0xff]   ;;  %v727_v40 = vld [vmem:[#allocation4 + $0xe0] sm:$0xff]  }
 0x117   :  { %v148_v43 = vrot.slane %v144_v41, %v863_v39  ;;  %v150_v44 = vmul.f32 %v144_v41, %v131_v30  ;;  %v728_v41 = vld [vmem:[#allocation4 + $0xd8] sm:$0xff]  }
 0x119   :  { %v151_v45 = vsub.f32 %v60_v42, %v150_v44  ;;  %v149_v46 = vmul.f32 %v148_v43, %v118_v14  ;;  %v729_v42 = vld [vmem:[#allocation4 + $0xd0] sm:$0xff]   ;;  %v730_v43 = vld [vmem:[#allocation4 + $0xc8] sm:$0xff]   ;;  %v731_v44 = vld [vmem:[#allocation4 + $0xc0] sm:$0xff]  }
 0x11b   :  { %v155_v47 = vrot.slane %v151_v45, %v863_v39 }
 0x11d   :  { %v156_v48 = vadd.f32 %v155_v47, %v149_v46 }
 0x11f   :  { %v157_v49 = vmul.f32 0.5, %v156_v48 }
 0x121   :  { %734 = vtanh.f32 %v157_v49 }
 0x12e   :  { %v735_v50 = vpop.eup %734 }
 0x12f   :  { %v159_v51 = vadd.f32 1.0, %v735_v50 }
 0x131   :  { %v160_v52 = vmul.f32 0.5, %v159_v51 }
 0x133   :  { %v180_v53 = vpack.c.bf16 %v160_v52, %v160_v52 }
 0x135   :  { %655 = vmatmul.mubr.bf16.vlgmr.msra.gmra.mxu1 %v180_v53 }
 0x136   :  { %694 = vmatprep.mubr.msk.bf16.mxu1 %vm814_vm0, %v813_v0  ;;  %679 = vmatpush3.bf16.msra.mxu1 %v724_v36 }
 0x137   :  { %680 = vmatprep.subr.bf16.mxu1 %v813_v0 }
 0x13a   :  { %681 = vmatpush3.bf16.msra.mxu1 %v725_v37 }
 0x13b   :  { %682 = vmatprep.subr.bf16.mxu1 %v813_v0 }
 0x13e   :  { %683 = vmatpush3.bf16.msra.mxu1 %v726_v38 }
 0x13f   :  { %684 = vmatprep.subr.bf16.mxu1 %v813_v0 }
 0x142   :  { %685 = vmatpush3.bf16.msra.mxu1 %v727_v40 }
 0x143   :  { %686 = vmatprep.subr.bf16.mxu1 %v813_v0 }
 0x146   :  { %687 = vmatpush3.bf16.msra.mxu1 %v728_v41 }
 0x147   :  { %688 = vmatprep.subr.bf16.mxu1 %v813_v0 }
 0x14a   :  { %689 = vmatpush3.bf16.msra.mxu1 %v729_v42 }
 0x14b   :  { %690 = vmatprep.subr.bf16.mxu1 %v813_v0 }
 0x14e   :  { %691 = vmatpush3.bf16.msra.mxu1 %v730_v43 }
 0x14f   :  { %692 = vmatprep.subr.bf16.mxu1 %v813_v0 }
 0x152   :  { %693 = vmatpush3.bf16.msra.mxu1 %v731_v44 }
 0x1f5   :  { %v263_v62 = vpop.f32.mrf.mxu1 }
 0x1f6   :  { %v269_v63 = vrot.slane %v263_v62, 4  ;;  %v276_v1 = vmul.f32 %v263_v62, %v263_v62 }
 0x1f7   :  { %v656_v2 = vpop.f32.mrf.mxu1 }
 0x1f8   :  { %v270_v3 = vadd.f32 %v269_v63, %v263_v62  ;;  %v277_v4 = vrot.slane %v276_v1, 4 }
 0x1f9   :  { %v266_v5 = vpop.f32.mrf.mxu1 }
 0x1fa   :  { %v271_v6 = vrot.slane %v270_v3, 2  ;;  %v278_v7 = vadd.f32 %v277_v4, %v276_v1 }
 0x1fb   :  { %v657_v8 = vpop.f32.mrf.mxu1 }
 0x1fc   :  { %v272_v9 = vadd.f32 %v271_v6, %v270_v3  ;;  %v279_v10 = vrot.slane %v278_v7, 2  ;;  %v322_v3 = vld [vmem:[#allocation6 + $0x4] sm:$0x1]  ;;  %v323_v6 = vld [vmem:[#allocation6 + $0x5] sm:$0x1] }
 0x1fe   :  { %v273_v11 = vrot.slane %v272_v9, 1  ;;  %v280_v12 = vadd.f32 %v279_v10, %v278_v7 }
 0x200   :  { %v274_v13 = vadd.f32 %v273_v11, %v272_v9  ;;  %v281_v14 = vrot.slane %v280_v12, 1 }
 0x202   :  { %v275_v15 = vmul.f32 0.125, %v274_v13  ;;  %v282_v16 = vadd.f32 %v281_v14, %v280_v12 }
 0x204   :  { %v283_v17 = vmul.f32 0.125, %v282_v16  ;;  %v284_v18 = vmul.f32 %v275_v15, %v275_v15 }
 0x206   :  { %v285_v19 = vsub.f32 %v283_v17, %v284_v18  ;;  %v588_v18 = vld [vmem:[#allocation6 + $0x6] ss:$0 sm:$0xff] }
 0x208   :  { %v286_v20 = vadd.f32 1e-05, %v285_v19 }
 0x20a   :  { %736 = vrsqrt.f32 %v286_v20 }
 0x217   :  { %v737_v22 = vpop.eup %736 }
 0x218   :  { %v288_v23 = vmul.f32 %v737_v22, %v178_v21 }
 0x21a   :  { %v292_v25 = vrot.slane %v288_v23, %v863_v39  ;;  %v294_v26 = vmul.f32 %v288_v23, %v275_v15 }
 0x21c   :  { %v295_v27 = vsub.f32 %v179_v24, %v294_v26  ;;  %v293_v28 = vmul.f32 %v292_v25, %v263_v62 }
 0x21e   :  { %v299_v29 = vrot.slane %v295_v27, %v863_v39 }
 0x220   :  { %v300_v30 = vadd.f32 %v299_v29, %v293_v28 }
 0x222   :  { %v301_v31 = vmul.f32 0.5, %v300_v30 }
 0x224   :  { %738 = vtanh.f32 %v301_v31 }
 0x231   :  { %v739_v32 = vpop.eup %738 }
 0x232   :  { %v303_v33 = vadd.f32 1.0, %v739_v32 }
 0x234   :  { %v304_v34 = vmul.f32 0.5, %v303_v33 }
 0x236   :  { %v324_v35 = vpack.c.bf16 %v304_v34, %v304_v34 }
 0x238   :  { %675 = vmatmul.mubr.bf16.vlgmr.msra.gmra.mxu0 %v324_v35 }
 0x2f8   :  { %v407_v45 = vpop.f32.mrf.mxu0 }
 0x2f9   :  { %v413_v46 = vrot.slane %v407_v45, 4  ;;  %v420_v47 = vmul.f32 %v407_v45, %v407_v45 }
 0x2fa   :  { %v676_v48 = vpop.f32.mrf.mxu0 }
 0x2fb   :  { %v414_v49 = vadd.f32 %v413_v46, %v407_v45  ;;  %v421_v50 = vrot.slane %v420_v47, 4 }
 0x2fc   :  { %v410_v51 = vpop.f32.mrf.mxu0 }
 0x2fd   :  { %v415_v52 = vrot.slane %v414_v49, 2  ;;  %v422_v53 = vadd.f32 %v421_v50, %v420_v47 }
 0x2fe   :  { %v677_v54 = vpop.f32.mrf.mxu0 }
 0x2ff   :  { %v416_v55 = vadd.f32 %v415_v52, %v414_v49  ;;  %v423_v56 = vrot.slane %v422_v53, 2 }
 0x301   :  { %v417_v57 = vrot.slane %v416_v55, 1  ;;  %v424_v58 = vadd.f32 %v423_v56, %v422_v53 }
 0x303   :  { %v418_v59 = vadd.f32 %v417_v57, %v416_v55  ;;  %v425_v60 = vrot.slane %v424_v58, 1 }
 0x305   :  { %v419_v61 = vmul.f32 0.125, %v418_v59  ;;  %v426_v62 = vadd.f32 %v425_v60, %v424_v58 }
 0x307   :  { %v427_v0 = vmul.f32 0.125, %v426_v62  ;;  %v428_v63 = vmul.f32 %v419_v61, %v419_v61 }
 0x309   :  { %v429_v1 = vsub.f32 %v427_v0, %v428_v63 }
 0x30b   :  { %v430_v2 = vadd.f32 1e-05, %v429_v1 }
 0x30d   :  { %740 = vrsqrt.f32 %v430_v2 }
 0x31a   :  { %v741_v4 = vpop.eup %740 }
 0x31b   :  { %v432_v5 = vmul.f32 %v741_v4, %v322_v3 }
 0x31d   :  { %v436_v7 = vrot.slane %v432_v5, %v863_v39  ;;  %v438_v8 = vmul.f32 %v432_v5, %v419_v61 }
 0x31f   :  { %v439_v9 = vsub.f32 %v323_v6, %v438_v8  ;;  %v437_v10 = vmul.f32 %v436_v7, %v407_v45 }
 0x321   :  { %v443_v11 = vrot.slane %v439_v9, %v863_v39 }
 0x323   :  { %v444_v12 = vadd.f32 %v443_v11, %v437_v10 }
 0x325   :  { %v445_v13 = vmul.f32 0.5, %v444_v12 }
 0x327   :  { %742 = vtanh.f32 %v445_v13 }
 0x334   :  { %v743_v14 = vpop.eup %742 }
 0x335   :  { %v447_v15 = vadd.f32 1.0, %v743_v14 }
 0x337   :  { %v448_v16 = vmul.f32 0.5, %v447_v15 }
 0x339   :  { %v449_v17 = vpack.c.bf16 %v448_v16, %v448_v16 }
 0x33b   :  { %695 = vmatmul.mubr.bf16.vlgmr.msra.gmra.mxu1 %v449_v17 }
 0x3fb   :  { %v554_v19 = vpop.f32.mrf.mxu1 }
 0x3fc   :  { %v555_v20 = vadd.f32 %v588_v18, %v554_v19 }
 0x3fd   :  { %v696_v21 = vpop.f32.mrf.mxu1 }
 0x3fe   :  { %561 = vst.msk [vmem:[%s893_s3] sm:$0xff] %vm560_vm2, %v555_v20 }
 0x3ff   :  { %v557_v22 = vpop.f32.mrf.mxu1 }
 0x401   :  { %v697_v23 = vpop.f32.mrf.mxu1 }
 0x402   :  { %566 = vsyncpa [#allocation3], 1 }
 0x403   :  { %567 = vsyncpa [#allocation5], 1 }

</bundles_post_ra>
